<compile_context>
chip_gen: v7x
topology: tpu7x:2x2x1
jax: 0.10.0
libtpu: 0.0.40
codegen_flags: <defaults>
</compile_context>

<pallas_src>
import jax
import jax.numpy as jnp
from jax.experimental import pallas as pl
from jax.experimental.pallas import tpu as pltpu

_LANES = 128
_MISH_LINEAR_THRESHOLD = 20.0  # beyond this, tanh(softplus(x)) == 1.0 in f32


def _mish_kernel(x_ref, o_ref):
    x = x_ref[...].astype(jnp.float32)
    # Single-exp Mish: tanh(softplus(x)) = t / (t + 2),  t = e^x * (e^x + 2).
    e = jnp.exp(x)
    t = e * (e + 2.0)
    mish = x * t * pl.reciprocal(t + 2.0, approx=True)
    # Large-x guard: avoids exp overflow (inf/nan in the unselected branch)
    # and is exact, since mish(x) == x to f32 precision for x > ~17.
    out = jnp.where(x > _MISH_LINEAR_THRESHOLD, x, mish)
    o_ref[...] = out.astype(o_ref.dtype)


def mish_forward(x, *, block_rows=4096):
    """Elementwise Mish over an arbitrarily-shaped array via a tiled Pallas kernel."""
    orig_shape = x.shape
    n = x.size

    # Lane-dense 2-D slab: flatten, then pad up to whole [block_rows, 128] tiles.
    rows = pl.cdiv(n, _LANES)
    block_rows = max(8, min(block_rows, ((rows + 7) // 8) * 8))
    block_rows = ((block_rows + 7) // 8) * 8          # keep sublane multiple of 8
    padded_rows = pl.cdiv(rows, block_rows) * block_rows
    padded_n = padded_rows * _LANES

    x_flat = jnp.ravel(x)
    if padded_n != n:
        x_flat = jnp.pad(x_flat, (0, padded_n - n))   # pad value 0 -> mish(0) = 0
    x2d = x_flat.reshape(padded_rows, _LANES)

    out2d = pl.pallas_call(
        _mish_kernel,
        out_shape=jax.ShapeDtypeStruct((padded_rows, _LANES), x.dtype),
        grid_spec=pltpu.PrefetchScalarGridSpec(
            num_scalar_prefetch=0,
            grid=(padded_rows // block_rows,),
            in_specs=[pl.BlockSpec((block_rows, _LANES), lambda i: (i, 0))],
            out_specs=pl.BlockSpec((block_rows, _LANES), lambda i: (i, 0)),
        ),
        compiler_params=pltpu.CompilerParams(
            dimension_semantics=("parallel",)),
    )(x2d)

    return out2d.reshape(-1)[:n].reshape(orig_shape)


if __name__ == "__main__":
    key = jax.random.PRNGKey(0)
    x = jax.random.normal(key, (2, 4, 16, 16), jnp.float32) * 3.0
    # Exercise the large-|x| guard path as well.
    x = x.at[0, 0, 0, 0].set(30.0)
    x = x.at[0, 0, 0, 1].set(-30.0)

    # Small block so this tiny demo still runs a multi-step pipelined grid
    # (2048 elements -> 16 rows of 128 -> grid of 2 with block_rows=8).
    out = mish_forward(x, block_rows=8)
    out = jax.block_until_ready(out)

    # Pure-JAX reference: x * tanh(softplus(x)).
    ref = x * jnp.tanh(jax.nn.softplus(x))
    assert out.shape == x.shape and out.dtype == x.dtype
    max_err = jnp.max(jnp.abs(out - ref))
    assert jnp.allclose(out, ref, atol=5e-3, rtol=5e-3), f"max abs err {max_err}"

    print("KERNEL_OK")
</pallas_src>

<mosaic_0001>
module attributes {stable_mosaic.version = 11 : i64} {
  func.func @_mish_kernel(%arg0: i32, %arg1: memref<8x128xf32, #tpu.memory_space<vmem>>, %arg2: memref<8x128xf32, #tpu.memory_space<vmem>>) attributes {dimension_semantics = [#tpu.dimension_semantics<parallel>], iteration_bounds = array<i64: 2>, scalar_prefetch = 0 : i64, scratch_operands = 0 : i64, tpu.core_type = #tpu.core_type<tc>, window_params = [{transform_indices = @transform_0, window_bounds = array<i64: 8, 128>}, {transform_indices = @transform_1, window_bounds = array<i64: 8, 128>}]} {
    %c0 = arith.constant 0 : index
    %c0_0 = arith.constant 0 : index
    %0 = vector.load %arg1[%c0, %c0_0] : memref<8x128xf32, #tpu.memory_space<vmem>>, vector<8x128xf32>
    %1 = math.exp %0 : vector<8x128xf32>
    %cst = arith.constant 2.000000e+00 : f32
    %2 = vector.broadcast %cst : f32 to vector<8x128xf32>
    %3 = arith.addf %1, %2 : vector<8x128xf32>
    %4 = arith.mulf %1, %3 : vector<8x128xf32>
    %5 = arith.mulf %0, %4 : vector<8x128xf32>
    %cst_1 = arith.constant 2.000000e+00 : f32
    %6 = vector.broadcast %cst_1 : f32 to vector<8x128xf32>
    %7 = arith.addf %4, %6 : vector<8x128xf32>
    %8 = tpu.reciprocal %7 {approx = true} : vector<8x128xf32> -> vector<8x128xf32>
    %9 = arith.mulf %5, %8 : vector<8x128xf32>
    %cst_2 = arith.constant 2.000000e+01 : f32
    %10 = vector.broadcast %cst_2 : f32 to vector<8x128xf32>
    %11 = arith.cmpf ogt, %0, %10 : vector<8x128xf32>
    %12 = arith.select %11, %0, %9 : vector<8x128xi1>, vector<8x128xf32>
    %c0_3 = arith.constant 0 : index
    %c0_4 = arith.constant 0 : index
    %13 = vector.load %arg2[%c0_3, %c0_4] : memref<8x128xf32, #tpu.memory_space<vmem>>, vector<8x128xf32>
    tpu.vector_store %arg2[%c0_3, %c0_4], %12 {strides = array<i32>} : memref<8x128xf32, #tpu.memory_space<vmem>>, vector<8x128xf32>,
    return
  }
  func.func @transform_0(%arg0: i32) -> (i32, i32) {
    %c0_i32 = arith.constant 0 : i32
    %c0_i32_0 = arith.constant 0 : i32
    return %arg0, %c0_i32 : i32, i32
  }
  func.func @transform_1(%arg0: i32) -> (i32, i32) {
    %c0_i32 = arith.constant 0 : i32
    %c0_i32_0 = arith.constant 0 : i32
    return %arg0, %c0_i32 : i32, i32
  }
}

</mosaic_0001>

<bundles_post_ra>
// kernel: tpu_custom_call.1
= control target key start
LH: loop header
LB: loop body
LE: loop exit
PB: predicated region body
PF: predicated region fallthrough
CT: control target
= control target key end

     0   :  { %6 = vsyncpa [#allocation3], 0  ;;  %s561_s0 = inlined_call_operand.hbm [shape: f32[16,128], index: 0, kind: input, shape index: {}]   ;;  %s562_s1 = inlined_call_operand.hbm [shape: f32[16,128], index: 1, kind: output, shape index: {}]  }
   0x1   :  { %8 = vsyncpa [#allocation3 + $0x1], 0 }
   0x2   :  { %9 = vsyncpa [#allocation4], 0 }
   0x3   :  { %11 = vsyncpa [#allocation4 + $0x1], 0  ;;  %s400_s6 = smov 0   ;;  %s402_s7 = smov 0  }
   0x4   :  { %s404_s8 = smov 0   ;;  %s406_s9 = smov 0  }
   0x5 LB: > { %s421_s10 = sadd.s32 4294967295, %s386_s9   ;;  %s228_s11 = sadd.s32 4294967294, %s386_s9   ;;  %s386_s9 = sphi %s406_s9, %s577_s9   ;;  %s382_s8 = sphi %s404_s8, %s576_s8   ;;  %s378_s7 = sphi %s402_s7, %s575_s7   ;;  %s374_s6 = sphi %s400_s6, %s574_s6  }
   0x6   : > { %s425_s12 = sadd.s32 1, %s386_s9   ;;  %s24_s13 = sadd.s32 1, %s382_s8 }
   0x7   : > { %s21_s14 = ssub.s32 %s386_s9, %s425_s12  ;;  %p31_p0 = scmp.ne.s32.totalorder %s382_s8, %s378_s7 }
   0x8   : > { %p22_p1 = scmp.eq.s32.totalorder %s21_s14, 0  ;;  %p32_p2 = scmp.eq.s32.totalorder %s386_s9, 0 }
   0x9   : > { %p37_p3 = scmp.ne.s32.totalorder %s378_s7, %s374_s6  ;;  %p38_p4 = scmp.eq.s32.totalorder %s421_s10, 0 }
   0xa   : > { %s437_s15 = scalar_select %p22_p1, %s382_s8, %s24_s13  }
   0xb   : > { %p439_p5 = por %p32_p2, %p31_p0  ;;  %p443_p6 = por %p38_p4, %p37_p3 }
   0xc   : > { %p61_p7 = scmp.eq.s32.totalorder %s421_s10, 1  ;;  %p67_p8 = scmp.eq.s32.totalorder %s228_s11, 1 }
   0xd   : > { %p252_p10 = scmp.lt.s32.totalorder %s386_s9, 2  ;;  %s87_s20 = sand.u32 1, %s382_s8  }
   0xe   : > { %p450_p11 = por %p61_p7, %p31_p0  ;;  %p454_p12 = por %p67_p8, %p37_p3 }
   0xf   : > { %s232_s21 = sshll.u32 %s386_s9, 7  ;;  %s231_s22 = sshll.u32 %s87_s20, 3 }
  0x10   : > { %s566_s18 = scalar_select %p450_p11, 1, 0 }
  0x11   : > { %s567_s19 = scalar_select %p454_p12, 1, 0 }
  0x12   : > { %s463_s25 = scalar_lea.hbm %s561_s0, %s232_s21  ;;  %s91_s26 = scalar_lea.vmem [#allocation2], %s231_s22 }
  0x13   : > { %s98_s27 = sshll.u32 %s91_s26, 4  ;;  %p467_p13 = pnand %p252_p10, %p439_p5  ;;  %s471_s27 = int_to_ptr.vmem [resolvable:$true] %s98_s27 }
  0x14   : > { %s88_s29 = scalar_lea.sflag [#allocation3], %s87_s20  ;;  %s290_s30 = scalar_lea.hbm %s463_s25, 128 }
  0x15   : > { %p291_p2 = scmp.ne.s32.totalorder %s463_s25, %s290_s30  ;;  %p292_p3 = pneg %p467_p13 }
  0x16   : > { %s295_s4 = scalar_lea.hbm %s561_s0, 256  ;;  %p296_p5 = scmp.lt.u32.totalorder %s463_s25, %s561_s0 }
  0x17   : > { %p293_p4 = pnand %p292_p3, %p291_p2  ;;  %p297_p8 = scmp.lt.u32.totalorder %s295_s4, %s290_s30 }
  0x18   : > { %p299_p9 = scmp.lt.u32.totalorder %s290_s30, %s463_s25 }
  0x19   : > { %p294_p7 = pneg %p293_p4  ;;  %p298_p10 = por %p297_p8, %p296_p5 }
  0x1b   : > { %p300_p0 = por %p299_p9, %p298_p10 }
  0x1d   : > { %p301_p1 = pnand %p300_p0, %p294_p7 }
  0x1f   : > { %304 = shalt.err (!%p301_p1)
}
  0x20   : > { %s305_s13 = scalar_lea.vmem %s471_s27, 128  ;;  %s388_s14 = smov [#allocation2]  }
  0x21   : > { %p306_p2 = scmp.ne.s32.totalorder %s471_s27, %s305_s13  ;;  %s310_s16 = sshll.u32 %s388_s14, 4  ;;  %s311_s16 = int_to_ptr.vmem [resolvable:$false] %s310_s16 }
  0x22   : > { %s312_s20 = scalar_lea.vmem %s311_s16, 256  ;;  %p313_p11 = scmp.lt.s32.totalorder %s471_s27, %s311_s16 }
  0x23   : > { %p308_p4 = pnand %p306_p2, %p292_p3  ;;  %p314_p5 = scmp.lt.s32.totalorder %s312_s20, %s305_s13 }
  0x25   : > { %p309_p12 = pneg %p308_p4  ;;  %p315_p8 = por %p314_p5, %p313_p11 }
  0x27   : > { %p316_p9 = pnand %p315_p8, %p309_p12 }
  0x29   : > { %319 = shalt.err (!%p316_p9)
}
  0x2a   : > { %247 = dma.hbm_to_vmem [thread:$0]  (!%p467_p13), %s463_s25, 128, %s471_s27, %s88_s29  }
  0x2b   : > { %p569_p0 = scmp.lt.s32.totalorder %s386_s9, 3  ;;  %p570_p1 = scmp.ge.s32.totalorder %s386_s9, 1 }
  0x2d   : > { %p104_p3 = pnand %p570_p1, %p569_p0 }
  0x2e   : > { %s505_s21 = sand.u32 (!%p104_p3), 1, %s378_s7  }
  0x2f   : > { %107 = sbr.rel (%p104_p3) target bundleno = 103 (0x67), region = 24  ;;  %s234_s22 = sshll.u32 (!%p104_p3), %s505_s21, 3 }
  0x30   : > { %s110_s23 = scalar_lea.sflag (!%p104_p3), [#allocation3], %s505_s21  ;;  %s113_s24 = scalar_lea.vmem (!%p104_p3), [#allocation2], %s234_s22 }
  0x36   : > { %365 = dma.done.wait (%p443_p6), %s110_s23, 128  }
  0x37   : > { %367 = vsyncadd (%p443_p6), %s110_s23, 4294967168  ;;  %v132_v0 = vld [vmem:[%s113_s24] sm:$0xff]  ;;  %s131_s25 = scalar_lea.vmem [#allocation5], %s234_s22  ;;  %s237_s27 = sshll.u32 %s421_s10, 7 }
  0x38   : > { %v133_v1 = vmul.f32 1.442695, %v132_v0  ;;  %s158_s26 = sshll.u32 %s131_s25, 4  ;;  %vm141_vm0 = vcmp.gt.f32.partialorder %v132_v0, 20.0  ;;  %s519_s29 = scalar_lea.hbm %s562_s1, %s237_s27  ;;  %s514_s26 = int_to_ptr.vmem [resolvable:$true] %s158_s26 }
  0x39   : > { %s145_s30 = scalar_lea.sflag [#allocation4], %s505_s21  ;;  %s320_s2 = scalar_lea.vmem %s514_s26, 128 }
  0x3a   : > { %286 = vpow2.f32 %v133_v1  ;;  %p321_p6 = scmp.ne.s32.totalorder %s514_s26, %s320_s2  ;;  %p571_p11 = scmp.ne.s32.totalorder %s566_s18, 0 }
  0x3b   : > { %s389_s10 = smov [#allocation5]  }
  0x3c   : > { %p322_p12 = pnand %p321_p6, %p571_p11  ;;  %s324_s3 = sshll.u32 %s389_s10, 4  ;;  %s325_s3 = int_to_ptr.vmem [resolvable:$false] %s324_s3 }
  0x3d   : > { %s326_s4 = scalar_lea.vmem %s325_s3, 256  ;;  %p327_p7 = scmp.lt.s32.totalorder %s514_s26, %s325_s3 }
  0x3e   : > { %p323_p13 = pneg %p322_p12  ;;  %p328_p10 = scmp.lt.s32.totalorder %s326_s4, %s320_s2 }
  0x40   : > { %p329_p2 = por %p328_p10, %p327_p7 }
  0x42   : > { %p330_p4 = pnand %p329_p2, %p323_p13 }
  0x44   : > { %v287_v2 = vpop.eup %286 }
  0x45   : > { %v135_v3 = vadd.f32 2.0, %v287_v2 }
  0x47   : > { %v136_v4 = vmul.f32 %v287_v2, %v135_v3 }
  0x49   : > { %v138_v5 = vadd.f32 2.0, %v136_v4  ;;  %v137_v6 = vmul.f32 %v136_v4, %v132_v0 }
  0x4b   : > { %288 = vrcp.f32 %v138_v5 }
  0x55   : > { %v289_v7 = vpop.eup %288 }
  0x56   : > { %v140_v8 = vmul.f32 %v289_v7, %v137_v6 }
  0x58   : > { %v142_v9 = vsel %vm141_vm0, %v132_v0, %v140_v8 }
  0x59   : > { %143 = vst [vmem:[%s131_s25] sm:$0xff] %v142_v9 }
  0x5a   : > { %333 = shalt.err (!%p330_p4)
}
  0x5b   : > { %s334_s5 = scalar_lea.hbm %s519_s29, 128  ;;  %s338_s14 = scalar_lea.hbm %s562_s1, 256 }
  0x5c   : > { %p335_p5 = scmp.ne.s32.totalorder %s519_s29, %s334_s5  ;;  %p339_p0 = scmp.lt.u32.totalorder %s519_s29, %s562_s1 }
  0x5d   : > { %p340_p1 = scmp.lt.u32.totalorder %s338_s14, %s334_s5  ;;  %p342_p6 = scmp.lt.u32.totalorder %s334_s5, %s519_s29 }
  0x5e   : > { %p336_p8 = pnand %p335_p5, %p571_p11 }
  0x5f   : > { %p341_p3 = por %p340_p1, %p339_p0 }
  0x60   : > { %p337_p9 = pneg %p336_p8 }
  0x61   : > { %p343_p12 = por %p342_p6, %p341_p3 }
  0x63   : > { %p344_p13 = pnand %p343_p12, %p337_p9 }
  0x65   : > { %347 = shalt.err (!%p344_p13)
}
  0x66   : > { %242 = dma.vmem_to_hbm [thread:$0]  (%p571_p11), %s514_s26, 128, %s519_s29, %s145_s30  }
  0x67 PF: > { %s170_s21 = sand.u32 1, %s374_s6   ;;  %p572_p7 = scmp.ne.s32.totalorder %s567_s19, 0 }
  0x68   : > { %p573_p10 = scmp.ge.s32.totalorder %s386_s9, 2  ;;  %s171_s22 = scalar_lea.sflag [#allocation4], %s170_s21 }
  0x6a   : > { %p249_p2 = pnand %p573_p10, %p572_p7 }
  0x6c   : > { %369 = dma.done.wait (!%p249_p2), %s171_s22, 128  }
  0x6d   : > { %371 = vsyncadd (!%p249_p2), %s171_s22, 4294967168  ;;  %p14_p4 = scmp.ge.s32.totalorder %s425_s12, 4   ;;  %s574_s6 = smov %s378_s7 }
  0x6e   : > { %s575_s7 = smov %s382_s8  ;;  %s576_s8 = smov %s437_s15 }
  0x6f   : > { %s577_s9 = smov %s425_s12  ;;  %16 = sbr.rel (!%p14_p4) target bundleno = 5 (0x5), region = 69 }
  0x76   :  { %176 = vsyncpa [#allocation3], 1 }
  0x77   :  { %178 = vsyncpa [#allocation3 + $0x1], 1 }
  0x78   :  { %179 = vsyncpa [#allocation4], 1 }
  0x79   :  { %181 = vsyncpa [#allocation4 + $0x1], 1 }

</bundles_post_ra>
